<compile_context>
chip_gen: v7x
topology: tpu7x:2x2x1
jax: 0.10.0
libtpu: 0.0.40
codegen_flags: <defaults>
</compile_context>

<pallas_src>
import functools

import jax
import jax.numpy as jnp
from jax.experimental import pallas as pl
from jax.experimental.pallas import tpu as pltpu


def focal_loss_kernel(w_ref, x_ref, t_ref, o_ref, *, gamma, num_classes,
                      rows, blk_r, blocks_per_core, needs_mask):
    c = pl.program_id(0)   # core-split ('parallel') axis
    k = pl.program_id(1)   # reduction ('arbitrary') axis

    x = x_ref[...].astype(jnp.float32)
    t = t_ref[...].astype(jnp.float32)

    # alpha = weight.gather(0, target.long()); weight lives in SMEM.
    if num_classes == 2:
        w0 = w_ref[0]
        w1 = w_ref[1]
        alpha = w0 + (w1 - w0) * t          # FMA form of the binary gather
    else:
        # TODO(synk): for num_classes >~ 8 replace the where-chain with a VMEM
        # gather / one-hot matmul (the MXU is completely idle in this kernel).
        idx = t.astype(jnp.int32)
        alpha = jnp.full_like(x, w_ref[0])
        for cls in range(1, num_classes):
            alpha = jnp.where(idx == cls, w_ref[cls], alpha)

    # BCE-with-logits form of F.binary_cross_entropy(sigmoid(x), t) with the
    # PyTorch -100 log clamp:
    #   -log(sigmoid(x))     = softplus(-x)
    #   -log(1 - sigmoid(x)) = softplus(x)
    #   softplus(x) = max(x, 0) + log(1 + exp(-|x|))   -> 1 exp + 1 log on EUP
    e = jnp.exp(-jnp.abs(x))                            # EUP #1
    sp_pos = jnp.maximum(x, 0.0) + jnp.log(1.0 + e)     # EUP #2  (softplus(x))
    sp_neg = sp_pos - x                                 # softplus(-x), VPU only
    bce = t * jnp.minimum(sp_neg, 100.0) + (1.0 - t) * jnp.minimum(sp_pos, 100.0)

    # Focal reweighting: p_e = exp(-bce); factor = (1 - p_e)**gamma.
    pe = jnp.exp(-bce)                                  # EUP #3
    base = 1.0 - pe
    gi = int(gamma)
    if gamma == gi and gi >= 1:
        ff = base
        for _ in range(gi - 1):                         # gamma=2 -> base*base
            ff = ff * base
    elif gamma == 0.0:
        ff = jnp.ones_like(base)
    else:
        # general (non-integer) gamma; guard base==0 so zero-loss elems stay 0
        ff = jnp.where(base > 0.0, jnp.power(jnp.maximum(base, 1e-30), gamma), 0.0)

    contrib = alpha * ff * bce

    if needs_mask:
        # Zero rows past the true row count (ragged last block and any clamped
        # core round-up blocks).  Pure VPU work; EUP/HBM remain the bottleneck.
        g = c * blocks_per_core + k
        valid = rows - g * blk_r
        row_id = jax.lax.broadcasted_iota(jnp.int32, contrib.shape, 0)
        contrib = jnp.where(row_id < valid, contrib, 0.0)

    # (blk_r, lane) -> (8, lane) with vreg-wise adds only (no XLU work); the
    # cross-lane reduction is deferred to the wrapper epilogue.
    part = jnp.sum(contrib.reshape(-1, 8, contrib.shape[-1]), axis=0)

    @pl.when(k == 0)
    def _():
        o_ref[...] = part

    @pl.when(k != 0)
    def _():
        o_ref[...] = o_ref[...] + part


def focal_loss_pallas(x, target, weight, *, gamma=2.0, blk_r=4096, lane=128,
                      num_cores=1, core_parallel=False):
    """x: any shape (flattened like .view(-1)); target: same numel, values are
    class indices into `weight` and BCE targets (any dtype; cast in-kernel);
    weight: (num_classes,).  num_cores=2 (+core_parallel=True) for v7x."""
    assert gamma >= 0, "gamma should be positive"
    n = int(x.size)
    assert int(target.size) == n

    x_flat = jnp.reshape(x, (-1,))
    t_flat = jnp.reshape(target, (-1,))     # keep caller dtype on the wire

    # Minimal alignment pad: only up to the next multiple of 8*128 elements so
    # the flat data can be viewed as (rows, 128) with rows % 8 == 0.  Padded
    # elements (x=-1e4, t=0) give bce == 0 -> contribute exactly 0.
    rem = (-n) % (8 * lane)
    if rem:
        # TODO(synk): this still copies the array once when n % 1024 != 0; a
        # separate tiny tail block would avoid even that.
        x_flat = jnp.concatenate([x_flat, jnp.full((rem,), -1e4, x_flat.dtype)])
        t_flat = jnp.concatenate([t_flat, jnp.zeros((rem,), t_flat.dtype)])
    rows = (n + rem) // lane
    x2 = x_flat.reshape(rows, lane)
    t2 = t_flat.reshape(rows, lane)

    # Block sizing: large lane-dense row blocks, shrunk for small inputs.
    blk_r_eff = max(8, (min(int(blk_r), rows) // 8) * 8)
    n_row_blocks = -(-rows // blk_r_eff)
    cores = max(1, min(int(num_cores), n_row_blocks))
    blocks_per_core = -(-n_row_blocks // cores)
    # Round-up blocks (cores*blocks_per_core > n_row_blocks) and the ragged
    # last block are clamped to a valid block index and fully masked in-kernel
    # instead of padding the data in HBM.
    needs_mask = cores * blocks_per_core * blk_r_eff != rows
    last_blk = n_row_blocks - 1

    def data_map(c, k):
        return (jnp.minimum(c * blocks_per_core + k, last_blk), 0)

    kernel = functools.partial(
        focal_loss_kernel, gamma=float(gamma), num_classes=int(weight.shape[0]),
        rows=rows, blk_r=blk_r_eff, blocks_per_core=blocks_per_core,
        needs_mask=needs_mask)

    first_axis = pltpu.CORE_PARALLEL if core_parallel else "parallel"

    partials = pl.pallas_call(
        kernel,
        out_shape=jax.ShapeDtypeStruct((cores, 8, lane), jnp.float32),
        grid=(cores, blocks_per_core),
        in_specs=[
            pl.BlockSpec(memory_space=pltpu.MemorySpace.SMEM),    # weight (tiny)
            pl.BlockSpec((blk_r_eff, lane), data_map),            # logits tile
            pl.BlockSpec((blk_r_eff, lane), data_map),            # target tile
        ],
        # One resident (8,128) partial-sum block per core (output-as-accumulator
        # across the 'arbitrary' axis).
        out_specs=pl.BlockSpec((None, 8, lane), lambda c, k: (c, 0, 0)),
        compiler_params=pltpu.CompilerParams(
            dimension_semantics=(first_axis, "arbitrary")),
    )(weight.astype(jnp.float32), x2, t2)

    return jnp.sum(partials) / jnp.float32(n)


def focal_loss_reference(x, target, weight, gamma=2.0):
    """Pure-JAX transcription of the PyTorch module (probability-space BCE)."""
    x = jnp.reshape(x, (-1,)).astype(jnp.float32)
    t = jnp.reshape(target, (-1,)).astype(jnp.float32)
    alpha = jnp.take(weight.astype(jnp.float32), t.astype(jnp.int32))
    p = jax.nn.sigmoid(x)
    bce = -(t * jnp.maximum(jnp.log(p), -100.0)
            + (1.0 - t) * jnp.maximum(jnp.log(1.0 - p), -100.0))
    pe = jnp.exp(-bce)
    return jnp.mean(alpha * (1.0 - pe) ** gamma * bce)


if __name__ == "__main__":
    key = jax.random.PRNGKey(0)
    k1, k2, k3, k4 = jax.random.split(key, 4)

    weight = jnp.array([0.25, 0.75], dtype=jnp.float32)

    # Primary case: NCHW logits (2,4,16,16); flat binary targets (f32, as the
    # PyTorch module implies; int8/bf16 targets also supported for bandwidth).
    x = jax.random.normal(k1, (2, 4, 16, 16), dtype=jnp.float32)
    target = jax.random.bernoulli(k2, p=0.3, shape=(2 * 4 * 16 * 16,)).astype(
        jnp.float32
    )
    loss = focal_loss_pallas(x, target, weight, gamma=2.0)
    jax.block_until_ready(loss)
    ref = focal_loss_reference(x, target, weight, gamma=2.0)
    assert jnp.allclose(loss, ref, rtol=1e-4, atol=1e-6), (loss, ref)

    # Ragged / multi-block / core-split path: rows=40 with blk_r=16 exercises
    # the in-kernel mask on the ragged last block plus the clamped round-up
    # block from the num_cores=2 split (serializes harmlessly on 1-TC chips).
    x_r = jax.random.normal(k3, (40 * 128,), dtype=jnp.float32)
    t_r = jax.random.bernoulli(k4, p=0.5, shape=(40 * 128,)).astype(jnp.float32)
    loss_r = focal_loss_pallas(x_r, t_r, weight, gamma=2.0, blk_r=16, num_cores=2)
    jax.block_until_ready(loss_r)
    ref_r = focal_loss_reference(x_r, t_r, weight, gamma=2.0)
    assert jnp.allclose(loss_r, ref_r, rtol=1e-4, atol=1e-6), (loss_r, ref_r)

    print("KERNEL_OK")
</pallas_src>

<mosaic_0001>
module attributes {stable_mosaic.version = 11 : i64} {
  func.func @focal_loss_kernel(%arg0: i32, %arg1: i32, %arg2: memref<2xf32, #tpu.memory_space<smem>>, %arg3: memref<16x128xf32, #tpu.memory_space<vmem>>, %arg4: memref<16x128xf32, #tpu.memory_space<vmem>>, %arg5: memref<1x8x128xf32, #tpu.memory_space<vmem>>) attributes {dimension_semantics = [#tpu.dimension_semantics<parallel>, #tpu.dimension_semantics<arbitrary>], iteration_bounds = array<i64: 1, 1>, scalar_prefetch = 0 : i64, scratch_operands = 0 : i64, tpu.core_type = #tpu.core_type<tc>, window_params = [{transform_indices = @transform_0, window_bounds = array<i64: 2>}, {transform_indices = @transform_1, window_bounds = array<i64: 16, 128>}, {transform_indices = @transform_2, window_bounds = array<i64: 16, 128>}, {transform_indices = @transform_3, window_bounds = array<i64: 1, 8, 128>}]} {
    %c0 = arith.constant 0 : index
    %c0_0 = arith.constant 0 : index
    %0 = vector.load %arg3[%c0, %c0_0] : memref<16x128xf32, #tpu.memory_space<vmem>>, vector<16x128xf32>
    %c0_1 = arith.constant 0 : index
    %c0_2 = arith.constant 0 : index
    %1 = vector.load %arg4[%c0_1, %c0_2] : memref<16x128xf32, #tpu.memory_space<vmem>>, vector<16x128xf32>
    %c0_3 = arith.constant 0 : index
    %2 = memref.load %arg2[%c0_3] : memref<2xf32, #tpu.memory_space<smem>>
    %c1 = arith.constant 1 : index
    %3 = memref.load %arg2[%c1] : memref<2xf32, #tpu.memory_space<smem>>
    %4 = arith.subf %3, %2 : f32
    %5 = vector.broadcast %4 : f32 to vector<16x128xf32>
    %6 = arith.mulf %5, %1 : vector<16x128xf32>
    %7 = vector.broadcast %2 : f32 to vector<16x128xf32>
    %8 = arith.addf %7, %6 : vector<16x128xf32>
    %9 = math.absf %0 : vector<16x128xf32>
    %cst = arith.constant 0.000000e+00 : f32
    %10 = vector.broadcast %cst : f32 to vector<16x128xf32>
    %11 = arith.subf %10, %9 : vector<16x128xf32>
    %12 = math.exp %11 : vector<16x128xf32>
    %cst_4 = arith.constant 0.000000e+00 : f32
    %13 = vector.broadcast %cst_4 : f32 to vector<16x128xf32>
    %14 = arith.maximumf %0, %13 : vector<16x128xf32>
    %cst_5 = arith.constant 1.000000e+00 : f32
    %15 = vector.broadcast %cst_5 : f32 to vector<16x128xf32>
    %16 = arith.addf %15, %12 : vector<16x128xf32>
    %17 = math.log %16 : vector<16x128xf32>
    %18 = arith.addf %14, %17 : vector<16x128xf32>
    %19 = arith.subf %18, %0 : vector<16x128xf32>
    %cst_6 = arith.constant 1.000000e+02 : f32
    %20 = vector.broadcast %cst_6 : f32 to vector<16x128xf32>
    %21 = arith.minimumf %19, %20 : vector<16x128xf32>
    %22 = arith.mulf %1, %21 : vector<16x128xf32>
    %cst_7 = arith.constant 1.000000e+00 : f32
    %23 = vector.broadcast %cst_7 : f32 to vector<16x128xf32>
    %24 = arith.subf %23, %1 : vector<16x128xf32>
    %cst_8 = arith.constant 1.000000e+02 : f32
    %25 = vector.broadcast %cst_8 : f32 to vector<16x128xf32>
    %26 = arith.minimumf %18, %25 : vector<16x128xf32>
    %27 = arith.mulf %24, %26 : vector<16x128xf32>
    %28 = arith.addf %22, %27 : vector<16x128xf32>
    %cst_9 = arith.constant 0.000000e+00 : f32
    %29 = vector.broadcast %cst_9 : f32 to vector<16x128xf32>
    %30 = arith.subf %29, %28 : vector<16x128xf32>
    %31 = math.exp %30 : vector<16x128xf32>
    %cst_10 = arith.constant 1.000000e+00 : f32
    %32 = vector.broadcast %cst_10 : f32 to vector<16x128xf32>
    %33 = arith.subf %32, %31 : vector<16x128xf32>
    %34 = arith.mulf %33, %33 : vector<16x128xf32>
    %35 = arith.mulf %8, %34 : vector<16x128xf32>
    %36 = arith.mulf %35, %28 : vector<16x128xf32>
    %37 = vector.shape_cast %36 : vector<16x128xf32> to vector<2x8x128xf32>
    %cst_11 = arith.constant dense<0.000000e+00> : vector<8x128xf32>
    %38 = vector.multi_reduction <add>, %37, %cst_11 [0] : vector<2x8x128xf32> to vector<8x128xf32>
    %c0_i32 = arith.constant 0 : i32
    %39 = arith.cmpi eq, %arg1, %c0_i32 : i32
    %40 = arith.extui %39 : i1 to i32
    %c0_i32_12 = arith.constant 0 : i32
    %41 = arith.cmpi ne, %40, %c0_i32_12 : i32
    scf.if %41 {
      %c0_15 = arith.constant 0 : index
      %c0_16 = arith.constant 0 : index
      %c0_17 = arith.constant 0 : index
      %45 = vector.load %arg5[%c0_15, %c0_16, %c0_17] : memref<1x8x128xf32, #tpu.memory_space<vmem>>, vector<1x8x128xf32>
      %46 = vector.shape_cast %45 : vector<1x8x128xf32> to vector<8x128xf32>
      %47 = vector.shape_cast %38 : vector<8x128xf32> to vector<1x8x128xf32>
      tpu.vector_store %arg5[%c0_15, %c0_16, %c0_17], %47 {strides = array<i32>} : memref<1x8x128xf32, #tpu.memory_space<vmem>>, vector<1x8x128xf32>,
    } else {
    }
    %c0_i32_13 = arith.constant 0 : i32
    %42 = arith.cmpi ne, %arg1, %c0_i32_13 : i32
    %43 = arith.extui %42 : i1 to i32
    %c0_i32_14 = arith.constant 0 : i32
    %44 = arith.cmpi ne, %43, %c0_i32_14 : i32
    scf.if %44 {
      %c0_15 = arith.constant 0 : index
      %c0_16 = arith.constant 0 : index
      %c0_17 = arith.constant 0 : index
      %45 = vector.load %arg5[%c0_15, %c0_16, %c0_17] : memref<1x8x128xf32, #tpu.memory_space<vmem>>, vector<1x8x128xf32>
      %46 = vector.shape_cast %45 : vector<1x8x128xf32> to vector<8x128xf32>
      %47 = arith.addf %46, %38 : vector<8x128xf32>
      %c0_18 = arith.constant 0 : index
      %c0_19 = arith.constant 0 : index
      %c0_20 = arith.constant 0 : index
      %48 = vector.load %arg5[%c0_18, %c0_19, %c0_20] : memref<1x8x128xf32, #tpu.memory_space<vmem>>, vector<1x8x128xf32>
      %49 = vector.shape_cast %48 : vector<1x8x128xf32> to vector<8x128xf32>
      %50 = vector.shape_cast %47 : vector<8x128xf32> to vector<1x8x128xf32>
      tpu.vector_store %arg5[%c0_18, %c0_19, %c0_20], %50 {strides = array<i32>} : memref<1x8x128xf32, #tpu.memory_space<vmem>>, vector<1x8x128xf32>,
    } else {
    }
    return
  }
  func.func @transform_0(%arg0: i32, %arg1: i32) -> i32 {
    %c0_i32 = arith.constant 0 : i32
    %c0_i32_0 = arith.constant 0 : i32
    return %c0_i32 : i32
  }
  func.func @transform_1(%arg0: i32, %arg1: i32) -> (i32, i32) {
    %c1_i32 = arith.constant 1 : i32
    %0 = arith.muli %arg0, %c1_i32 : i32
    %1 = arith.addi %0, %arg1 : i32
    %c0_i32 = arith.constant 0 : i32
    %2 = arith.minsi %1, %c0_i32 : i32
    %c0_i32_0 = arith.constant 0 : i32
    %c0_i32_1 = arith.constant 0 : i32
    return %2, %c0_i32_0 : i32, i32
  }
  func.func @transform_2(%arg0: i32, %arg1: i32) -> (i32, i32) {
    %c1_i32 = arith.constant 1 : i32
    %0 = arith.muli %arg0, %c1_i32 : i32
    %1 = arith.addi %0, %arg1 : i32
    %c0_i32 = arith.constant 0 : i32
    %2 = arith.minsi %1, %c0_i32 : i32
    %c0_i32_0 = arith.constant 0 : i32
    %c0_i32_1 = arith.constant 0 : i32
    return %2, %c0_i32_0 : i32, i32
  }
  func.func @transform_3(%arg0: i32, %arg1: i32) -> (i32, i32, i32) {
    %c0_i32 = arith.constant 0 : i32
    %c0_i32_0 = arith.constant 0 : i32
    %c0_i32_1 = arith.constant 0 : i32
    return %arg0, %c0_i32, %c0_i32_0 : i32, i32, i32
  }
}

</mosaic_0001>

<bundles_post_ra>
// kernel: tpu_custom_call.1
= control target key start
LH: loop header
LB: loop body
LE: loop exit
PB: predicated region body
PF: predicated region fallthrough
CT: control target
= control target key end

     0   :  { %8 = vsyncpa [#allocation5], 0  ;;  %s344_s0 = inlined_call_operand.hbm [shape: f32[2], index: 0, kind: input, shape index: {}]   ;;  %s345_s1 = inlined_call_operand.hbm [shape: f32[16,128], index: 1, kind: input, shape index: {}]   ;;  %s346_s2 = inlined_call_operand.hbm [shape: f32[16,128], index: 2, kind: input, shape index: {}]   ;;  %s347_s3 = inlined_call_operand.hbm [shape: f32[1,8,128], index: 3, kind: output, shape index: {}]  }
   0x1   :  { %9 = vsyncpa [#allocation3], 0 }
   0x2   :  { %10 = vsyncpa [#allocation8], 0 }
   0x3   :  { %11 = vsyncpa [#allocation4], 0  ;;  %s186_s14 = scalar_lea.hbm %s344_s0, 16 }
   0x4   :  { %p187_p0 = scmp.ne.s32.totalorder %s344_s0, %s186_s14  ;;  %p190_p1 = scmp.lt.u32.totalorder %s186_s14, %s344_s0 }
   0x6   :  { %p192_p2 = pnand %p190_p1, %p187_p0 }
   0x8   :  { %195 = shalt.err (!%p192_p2)
}
   0x9   :  { %s270_s19 = smov [#allocation2]   ;;  %s271_s22 = smov [#allocation6]  }
   0xa   :  { %19 = dma.hbm_to_smem %s344_s0, 16, %s270_s19, [#allocation5]  }
   0xb   :  { %s31_s23 = sshll.u32 %s271_s22, 4  ;;  %s196_s26 = scalar_lea.hbm %s345_s1, 256  ;;  %s32_s23 = int_to_ptr.vmem [resolvable:$true] %s31_s23 }
   0xc   :  { %p197_p3 = scmp.ne.s32.totalorder %s345_s1, %s196_s26  ;;  %p200_p4 = scmp.lt.u32.totalorder %s196_s26, %s345_s1 }
   0xe   :  { %p202_p5 = pnand %p200_p4, %p197_p3 }
  0x10   :  { %205 = shalt.err (!%p202_p5)
}
  0x11   :  { %s206_s4 = scalar_lea.vmem %s32_s23, 256  ;;  %p211_p7 = scmp.lt.s32.totalorder %s32_s23, %s32_s23 }
  0x12   :  { %p207_p6 = scmp.ne.s32.totalorder %s32_s23, %s206_s4  ;;  %p212_p8 = scmp.lt.s32.totalorder %s206_s4, %s206_s4 }
  0x14   :  { %p213_p9 = por %p212_p8, %p211_p7 }
  0x16   :  { %p214_p10 = pnand %p213_p9, %p207_p6 }
  0x18   :  { %217 = shalt.err (!%p214_p10)
}
  0x19   :  { %s272_s0 = smov 128   ;;  %s273_s5 = smov 8  }
  0x1a   :  { %37 = dma.hbm_to_vmem [thread:$0]  %s345_s1, 256, %s32_s23, [#allocation3], %s272_s0, %s272_s0, %s273_s5  }
  0x1b   :  { %s274_s8 = smov [#allocation7]   ;;  %s218_s12 = scalar_lea.hbm %s346_s2, 256 }
  0x1c   :  { %s49_s9 = sshll.u32 %s274_s8, 4  ;;  %p219_p11 = scmp.ne.s32.totalorder %s346_s2, %s218_s12  ;;  %s50_s9 = int_to_ptr.vmem [resolvable:$true] %s49_s9 }
  0x1d   :  { %p222_p12 = scmp.lt.u32.totalorder %s218_s12, %s346_s2 }
  0x1f   :  { %p224_p13 = pnand %p222_p12, %p219_p11 }
  0x21   :  { %227 = shalt.err (!%p224_p13)
}
  0x22   :  { %s228_s17 = scalar_lea.vmem %s50_s9, 256  ;;  %p233_p1 = scmp.lt.s32.totalorder %s50_s9, %s50_s9 }
  0x23   :  { %p229_p0 = scmp.ne.s32.totalorder %s50_s9, %s228_s17  ;;  %p234_p2 = scmp.lt.s32.totalorder %s228_s17, %s228_s17 }
  0x25   :  { %p235_p3 = por %p234_p2, %p233_p1 }
  0x27   :  { %p236_p4 = pnand %p235_p3, %p229_p0 }
  0x29   :  { %239 = shalt.err (!%p236_p4)
}
  0x2a   :  { %55 = dma.hbm_to_vmem [thread:$0]  %s346_s2, 256, %s50_s9, [#allocation8], %s272_s0, %s272_s0, %s273_s5  }
  0x2b   :  { %262 = dma.done.wait [#allocation5], 16  }
  0x2c   :  { %263 = vsyncadd [#allocation5], 4294967280 }
  0x2d   :  { %264 = dma.done.wait [#allocation3], 256  }
  0x2e   :  { %265 = vsyncadd [#allocation3], 4294967040 }
  0x2f   :  { %266 = dma.done.wait [#allocation8], 256  }
  0x30   :  { %267 = vsyncadd [#allocation8], 4294967040 }
  0x31   :  { %65 = sfence }
  0x32   :  { %v74_v0 = vld [vmem:[#allocation6] sm:$0xff]  ;;  %v75_v1 = vld [vmem:[#allocation6 + $0x8] sm:$0xff]  ;;  %v76_v14 = vld [vmem:[#allocation7] sm:$0xff]  ;;  %s78_s2 = sld [smem:[#allocation2]]  ;;  %s167_s19 = sld [smem:[#allocation2 + $0x1]] }
  0x33   :  { %v87_v2 = vand.u32 2147483647, %v74_v0  ;;  %v88_v3 = vand.u32 2147483647, %v75_v1  ;;  %v95_v12 = vmax.f32 %v74_v0, 0.0  ;;  %v96_v15 = vmax.f32 %v75_v1, 0.0 }
  0x34   :  { %v77_v17 = vld [vmem:[#allocation7 + $0x8] sm:$0xff]  ;;  %v111_v21 = vsub.f32 1.0, %v76_v14  ;;  %s275_s21 = smov [#allocation9]  }
  0x35   :  { %v89_v4 = vsub.f32 0.0, %v87_v2  ;;  %v90_v5 = vsub.f32 0.0, %v88_v3  ;;  %v112_v23 = vsub.f32 1.0, %v77_v17  ;;  %s152_s22 = sshll.u32 %s275_s21, 4  ;;  %s153_s22 = int_to_ptr.vmem [resolvable:$true] %s152_s22 }
  0x36   :  { %s240_s23 = scalar_lea.vmem %s153_s22, 128  ;;  %p245_p6 = scmp.lt.s32.totalorder %s153_s22, %s153_s22 }
  0x37   :  { %v91_v6 = vmul.f32 1.442695, %v89_v4  ;;  %v93_v7 = vmul.f32 1.442695, %v90_v5  ;;  %p241_p5 = scmp.ne.s32.totalorder %s153_s22, %s240_s23  ;;  %p246_p7 = scmp.lt.s32.totalorder %s240_s23, %s240_s23 }
  0x38   :  { %s80_s20 = ssub.f32 %s167_s19, %s78_s2  ;;  %v84_v43 = vstv %s78_s2 }
  0x39   :  { %174 = vpow2.f32 %v91_v6  ;;  %p247_p8 = por %p246_p7, %p245_p6 }
  0x3a   :  { %176 = vpow2.f32 %v93_v7  ;;  %v81_v40 = vstv %s80_s20 }
  0x3b   :  { %v82_v41 = vmul.f32 %v81_v40, %v76_v14  ;;  %v83_v42 = vmul.f32 %v81_v40, %v77_v17  ;;  %p248_p9 = pnand %p247_p8, %p241_p5 }
  0x3d   :  { %v85_v46 = vadd.f32 %v84_v43, %v82_v41  ;;  %v86_v48 = vadd.f32 %v84_v43, %v83_v42 }
  0x43   :  { %v175_v8 = vpop.eup %174 }
  0x44   :  { %v177_v9 = vpop.eup %176  ;;  %v97_v10 = vadd.f32 1.0, %v175_v8 }
  0x45   :  { %v98_v11 = vadd.f32 1.0, %v177_v9 }
  0x46   :  { %178 = vlog2.f32 %v97_v10 }
  0x47   :  { %180 = vlog2.f32 %v98_v11 }
  0x50   :  { %v179_v13 = vpop.eup %178 }
  0x51   :  { %v181_v16 = vpop.eup %180  ;;  %v100_v18 = vmul.f32 0.6931472, %v179_v13 }
  0x52   :  { %v102_v19 = vmul.f32 0.6931472, %v181_v16 }
  0x53   :  { %v103_v20 = vadd.f32 %v100_v18, %v95_v12 }
  0x54   :  { %v104_v22 = vadd.f32 %v102_v19, %v96_v15 }
  0x55   :  { %v105_v24 = vsub.f32 %v103_v20, %v74_v0  ;;  %v113_v25 = vmin.f32 %v103_v20, 100.0 }
  0x56   :  { %v106_v26 = vsub.f32 %v104_v22, %v75_v1  ;;  %v114_v27 = vmin.f32 %v104_v22, 100.0 }
  0x57   :  { %v107_v28 = vmin.f32 %v105_v24, 100.0  ;;  %v115_v29 = vmul.f32 %v113_v25, %v111_v21 }
  0x58   :  { %v108_v30 = vmin.f32 %v106_v26, 100.0  ;;  %v116_v31 = vmul.f32 %v114_v27, %v112_v23 }
  0x59   :  { %v109_v32 = vmul.f32 %v107_v28, %v76_v14 }
  0x5a   :  { %v110_v33 = vmul.f32 %v108_v30, %v77_v17 }
  0x5b   :  { %v117_v34 = vadd.f32 %v115_v29, %v109_v32 }
  0x5c   :  { %v118_v35 = vadd.f32 %v116_v31, %v110_v33 }
  0x5d   :  { %v119_v36 = vsub.f32 0.0, %v117_v34 }
  0x5e   :  { %v120_v37 = vsub.f32 0.0, %v118_v35 }
  0x5f   :  { %v121_v38 = vmul.f32 1.442695, %v119_v36 }
  0x60   :  { %v123_v39 = vmul.f32 1.442695, %v120_v37 }
  0x61   :  { %182 = vpow2.f32 %v121_v38 }
  0x62   :  { %184 = vpow2.f32 %v123_v39 }
  0x6b   :  { %v183_v44 = vpop.eup %182 }
  0x6c   :  { %v185_v45 = vpop.eup %184  ;;  %v125_v47 = vsub.f32 1.0, %v183_v44 }
  0x6d   :  { %v126_v49 = vsub.f32 1.0, %v185_v45 }
  0x6e   :  { %v127_v50 = vmul.f32 %v125_v47, %v125_v47 }
  0x6f   :  { %v128_v51 = vmul.f32 %v126_v49, %v126_v49 }
  0x70   :  { %v129_v52 = vmul.f32 %v127_v50, %v85_v46 }
  0x71   :  { %v130_v53 = vmul.f32 %v128_v51, %v86_v48 }
  0x72   :  { %v131_v54 = vmul.f32 %v129_v52, %v117_v34 }
  0x73   :  { %v132_v55 = vmul.f32 %v130_v53, %v118_v35 }
  0x75   :  { %v133_v56 = vadd.f32 %v132_v55, %v131_v54 }
  0x77   :  { %138 = vst [vmem:[#allocation9] sm:$0xff] %v133_v56 }
  0x78   :  { %251 = shalt.err (!%p248_p9)
}
  0x79   :  { %s252_s26 = scalar_lea.hbm %s347_s3, 128 }
  0x7a   :  { %p253_p10 = scmp.ne.s32.totalorder %s347_s3, %s252_s26  ;;  %p256_p11 = scmp.lt.u32.totalorder %s252_s26, %s347_s3 }
  0x7c   :  { %p258_p12 = pnand %p256_p11, %p253_p10 }
  0x7e   :  { %261 = shalt.err (!%p258_p12)
}
  0x7f   :  { %155 = dma.vmem_to_hbm [thread:$0]  %s153_s22, 128, %s347_s3, [#allocation4]  }
  0x80   :  { %268 = dma.done.wait [#allocation4], 128  }
  0x81   :  { %269 = vsyncadd [#allocation4], 4294967168 }
  0x82   :  { %159 = vsyncpa [#allocation3], 1 }
  0x83   :  { %160 = vsyncpa [#allocation8], 1 }
  0x84   :  { %161 = vsyncpa [#allocation4], 1 }
  0x85   :  { %162 = vsyncpa [#allocation5], 1 }

</bundles_post_ra>
